<compile_context>
chip_gen: v5e
topology: v5e:2x2
jax: 0.10.0
libtpu: 0.0.40
codegen_flags: <defaults>
</compile_context>

<pallas_src>
import jax
import jax.numpy as jnp
from jax import lax
from jax.experimental import pallas as pl
from jax.experimental.pallas import tpu as pltpu


def _coattention_kernel(xq_ref, xr_ref, m_ref, v_ref, out_ref):
    # xq_ref : (1, Cin, TQ)   query features, channels-major
    # xr_ref : (1, Cin, Nk)   reference features, channels-major
    # m_ref  : (Cin, Cin)     M = Wq^T Wk
    # v_ref  : (Cin, 1)       v = Wk^T bq   (float32)
    # out_ref: (1, Cin, TQ)
    xq = xq_ref[0]                       # (Cin, TQ)
    xr = xr_ref[0]                       # (Cin, Nk)

    # a[i, d] = sum_c xq[c, i] * M[c, d]                      -> (TQ, Cin)
    a = lax.dot_general(xq, m_ref[...],
                        dimension_numbers=(((0,), (0,)), ((), ())),
                        preferred_element_type=jnp.float32)

    # s[i, j] = sum_d a[i, d] * xr[d, j] = xq_i^T (Wq^T Wk) xr_j   -> (TQ, Nk)
    s = lax.dot_general(a.astype(xr.dtype), xr,
                        dimension_numbers=(((1,), (0,)), ((), ())),
                        preferred_element_type=jnp.float32)

    # Per-reference bias term bq^T Wk xr_j (per-query bias terms cancel in the
    # softmax over j, so they are dropped).
    kb = jnp.sum(xr * v_ref[...], axis=0, keepdims=True)     # (1, Nk), f32
    s = s + kb

    # Row softmax over reference locations (last axis), f32 math throughout.
    # Exact division (no approx reciprocal): normalization error would show up
    # directly in the output.
    m = jnp.max(s, axis=-1, keepdims=True)
    e = jnp.exp(s - m)
    l = jnp.sum(e, axis=-1, keepdims=True)
    p = (e / l).astype(xr.dtype)                              # (TQ, Nk)

    # out[c, i] = sum_j xr[c, j] * p[i, j]                    -> (Cin, TQ)
    out = lax.dot_general(xr, p,
                          dimension_numbers=(((1,), (1,)), ((), ())),
                          preferred_element_type=jnp.float32)
    out_ref[0] = out.astype(out_ref.dtype)


def _pick_query_tile(nq, target):
    """Largest multiple-of-128 divisor of nq that is <= target, else full nq."""
    if nq <= target:
        return nq
    t = (min(target, nq) // 128) * 128
    while t >= 128:
        if nq % t == 0:
            return t
        t -= 128
    return nq


def co_attention_layer(query_features, reference_features, wq, bq, wk, bk,
                       *, compute_dtype=jnp.float32):
    """query_features, reference_features: NCHW.
    wq, wk: (hidden, Cin) squeezed 1x1-conv weights; bq, bk: (hidden,).
    compute_dtype: dtype of the MXU operands for the two large matmuls.  Use
    jnp.bfloat16 on v6e/v7x when ~1e-3 relative error is acceptable (softmax
    math stays in float32 regardless)."""
    B, Cin, Hq, Wq_ = query_features.shape
    _, Cr, Hr, Wr = reference_features.shape
    assert Cr == Cin
    Nq, Nk = Hq * Wq_, Hr * Wr

    # Free reshapes only: channels-major, spatial axis on the lane dim.
    xq = query_features.reshape(B, Cin, Nq).astype(compute_dtype)
    xr = reference_features.reshape(B, Cin, Nk).astype(compute_dtype)

    # Fold the 1x1-conv projections (see header comment).  precision='highest'
    # keeps the fold at true f32 accuracy (it is tiny: hidden x Cin x Cin).
    wq32 = wq.astype(jnp.float32)
    wk32 = wk.astype(jnp.float32)
    m_fold = jnp.einsum('hc,hd->cd', wq32, wk32,
                        precision='highest').astype(compute_dtype)   # (Cin, Cin)
    v_fold = jnp.einsum('h,hc->c', bq.astype(jnp.float32), wk32,
                        precision='highest').reshape(Cin, 1)          # (Cin,1) f32

    # Generation-aware query tile (v7x has 64 MiB VMEM -> smaller target).
    try:
        vmem_cap = int(pltpu.get_tpu_info().vmem_capacity_bytes)
    except Exception:
        vmem_cap = 128 * 1024 * 1024
    tq_target = 512 if vmem_cap >= (100 << 20) else 256
    TQ = _pick_query_tile(Nq, tq_target)
    n_qt = Nq // TQ

    # VMEM budget: double-buffered xq/out tiles + double-buffered xr + scores.
    isz = jnp.dtype(compute_dtype).itemsize
    est = (2 * Cin * TQ * isz            # xq tile, double-buffered
           + 2 * Cin * TQ * 4            # out tile (f32), double-buffered
           + 2 * Cin * Nk * isz          # xr, double-buffered
           + 3 * TQ * Nk * 4             # s / e / p intermediates (f32)
           + TQ * Cin * 4                # a
           + (1 << 20))
    vmem_limit = int(min(max(est, 32 << 20), (vmem_cap * 3) // 4))

    flops = 2 * B * (Nq * Cin * Cin + 2 * Nq * Nk * Cin + Nk * Cin) + 5 * B * Nq * Nk
    cost = pl.CostEstimate(
        flops=int(flops),
        transcendentals=int(B * Nq * Nk),
        bytes_accessed=int(isz * B * Cin * (Nq + Nk) + 4 * B * Cin * Nq
                           + 4 * Cin * (Cin + 1)),
    )

    out_flat = pl.pallas_call(
        _coattention_kernel,
        out_shape=jax.ShapeDtypeStruct((B, Cin, Nq), jnp.float32),
        grid_spec=pltpu.PrefetchScalarGridSpec(
            num_scalar_prefetch=0,
            grid=(B, n_qt),
            in_specs=[
                pl.BlockSpec((1, Cin, TQ), lambda b, q: (b, 0, q)),   # xq tile
                pl.BlockSpec((1, Cin, Nk), lambda b, q: (b, 0, 0)),   # xr (full)
                pl.BlockSpec((Cin, Cin), lambda b, q: (0, 0)),        # M
                pl.BlockSpec((Cin, 1), lambda b, q: (0, 0)),          # v
            ],
            out_specs=pl.BlockSpec((1, Cin, TQ), lambda b, q: (b, 0, q)),
        ),
        compiler_params=pltpu.CompilerParams(
            dimension_semantics=("parallel", "parallel"),
            vmem_limit_bytes=vmem_limit),
        cost_estimate=cost,
    )(xq, xr, m_fold, v_fold)

    # (B, Cin, Nq) -> NCHW, again a free reshape (no transpose).
    return out_flat.reshape(B, Cin, Hq, Wq_)


def _reference_jax(query_features, reference_features, wq, bq, wk, bk):
    """Pure-JAX reference matching the PyTorch forward exactly (true f32)."""
    B, Cin, Hq, Wq_ = query_features.shape
    _, _, Hr, Wr = reference_features.shape
    Q = jnp.einsum('oc,bcij->boij', wq, query_features,
                   precision='highest') + bq[None, :, None, None]
    K = jnp.einsum('oc,bckl->bokl', wk, reference_features,
                   precision='highest') + bk[None, :, None, None]
    V = reference_features.reshape(B, Cin, Hr * Wr)
    attn = jnp.einsum('bcij,bckl->bijkl', Q, K,
                      precision='highest').reshape(B, Hq, Wq_, Hr * Wr)
    attn = jax.nn.softmax(attn, axis=3)
    out = jnp.einsum('bijp,bcp->bcij', attn, V, precision='highest')
    return out


if __name__ == "__main__":
    key = jax.random.PRNGKey(0)
    k1, k2, k3, k4, k5, k6 = jax.random.split(key, 6)

    # Small shapes consistent with the module (input_channels, hidden_channels).
    B, Cin, H, W = 2, 16, 8, 8
    hidden = 32

    query_features = jax.random.normal(k1, (B, Cin, H, W), dtype=jnp.float32)
    reference_features = jax.random.normal(k2, (B, Cin, H, W), dtype=jnp.float32)

    scale = 1.0 / (Cin ** 0.5)
    wq = jax.random.uniform(k3, (hidden, Cin), jnp.float32, -scale, scale)
    bq = jax.random.uniform(k4, (hidden,), jnp.float32, -scale, scale)
    wk = jax.random.uniform(k5, (hidden, Cin), jnp.float32, -scale, scale)
    bk = jax.random.uniform(k6, (hidden,), jnp.float32, -scale, scale)

    out = co_attention_layer(query_features, reference_features, wq, bq, wk, bk)
    out = jax.block_until_ready(out)

    ref = _reference_jax(query_features, reference_features, wq, bq, wk, bk)
    assert out.shape == (B, Cin, H, W), out.shape
    # With exact softmax normalization and f32 matmuls the max error is <1e-5.
    # The headroom below only covers TPU generations whose DEFAULT-precision
    # f32 MXU contractions inside the kernel are executed as bf16 passes.
    assert jnp.allclose(out, ref, atol=2e-2, rtol=2e-2), \
        float(jnp.max(jnp.abs(out - ref)))

    print("KERNEL_OK")
</pallas_src>

<mosaic_0001>
module attributes {stable_mosaic.version = 11 : i64} {
  func.func @_coattention_kernel(%arg0: i32, %arg1: i32, %arg2: memref<1x16x64xf32, #tpu.memory_space<vmem>>, %arg3: memref<1x16x64xf32, #tpu.memory_space<vmem>>, %arg4: memref<16x16xf32, #tpu.memory_space<vmem>>, %arg5: memref<16x1xf32, #tpu.memory_space<vmem>>, %arg6: memref<1x16x64xf32, #tpu.memory_space<vmem>>) attributes {dimension_semantics = [#tpu.dimension_semantics<parallel>, #tpu.dimension_semantics<parallel>], iteration_bounds = array<i64: 2, 1>, scalar_prefetch = 0 : i64, scratch_operands = 0 : i64, tpu.core_type = #tpu.core_type<tc>, window_params = [{transform_indices = @transform_0, window_bounds = array<i64: 1, 16, 64>}, {transform_indices = @transform_1, window_bounds = array<i64: 1, 16, 64>}, {pipeline_mode = #tpu.pipeline_mode<synchronous>, transform_indices = @transform_2, window_bounds = array<i64: 16, 16>}, {pipeline_mode = #tpu.pipeline_mode<synchronous>, transform_indices = @transform_3, window_bounds = array<i64: 16, 1>}, {transform_indices = @transform_4, window_bounds = array<i64: 1, 16, 64>}]} {
    %c0 = arith.constant 0 : index
    %c0_0 = arith.constant 0 : index
    %c0_1 = arith.constant 0 : index
    %0 = vector.load %arg2[%c0, %c0_0, %c0_1] : memref<1x16x64xf32, #tpu.memory_space<vmem>>, vector<1x16x64xf32>
    %1 = vector.shape_cast %0 : vector<1x16x64xf32> to vector<16x64xf32>
    %c0_2 = arith.constant 0 : index
    %c0_3 = arith.constant 0 : index
    %c0_4 = arith.constant 0 : index
    %2 = vector.load %arg3[%c0_2, %c0_3, %c0_4] : memref<1x16x64xf32, #tpu.memory_space<vmem>>, vector<1x16x64xf32>
    %3 = vector.shape_cast %2 : vector<1x16x64xf32> to vector<16x64xf32>
    %c0_5 = arith.constant 0 : index
    %c0_6 = arith.constant 0 : index
    %4 = vector.load %arg4[%c0_5, %c0_6] : memref<16x16xf32, #tpu.memory_space<vmem>>, vector<16x16xf32>
    %cst = arith.constant dense<0.000000e+00> : vector<64x16xf32>
    %5 = tpu.matmul %1, %4, %cst {dimension_numbers = #tpu.dot_dimension_numbers<[0], [0], [1], [1], [0, 1, 1, 1], [], []>} : vector<16x64xf32>, vector<16x16xf32>, vector<64x16xf32> -> vector<64x16xf32>
    %cst_7 = arith.constant dense<0.000000e+00> : vector<64x64xf32>
    %6 = tpu.matmul %5, %3, %cst_7 {dimension_numbers = #tpu.dot_dimension_numbers<[1], [0], [0], [1], [0, 0, 1, 1], [], []>} : vector<64x16xf32>, vector<16x64xf32>, vector<64x64xf32> -> vector<64x64xf32>
    %c0_8 = arith.constant 0 : index
    %c0_9 = arith.constant 0 : index
    %7 = vector.load %arg5[%c0_8, %c0_9] : memref<16x1xf32, #tpu.memory_space<vmem>>, vector<16x1xf32>
    %8 = vector.broadcast %7 : vector<16x1xf32> to vector<16x64xf32>
    %9 = arith.mulf %3, %8 : vector<16x64xf32>
    %cst_10 = arith.constant dense<0.000000e+00> : vector<64xf32>
    %10 = vector.multi_reduction <add>, %9, %cst_10 [0] : vector<16x64xf32> to vector<64xf32>
    %11 = vector.shape_cast %10 : vector<64xf32> to vector<1x64xf32>
    %12 = vector.broadcast %11 : vector<1x64xf32> to vector<64x64xf32>
    %13 = arith.addf %6, %12 : vector<64x64xf32>
    %cst_11 = arith.constant dense<0xFF800000> : vector<64xf32>
    %14 = vector.multi_reduction <maximumf>, %13, %cst_11 [1] : vector<64x64xf32> to vector<64xf32>
    %15 = vector.shape_cast %14 : vector<64xf32> to vector<64x1xf32>
    %16 = vector.broadcast %15 : vector<64x1xf32> to vector<64x64xf32>
    %17 = arith.subf %13, %16 : vector<64x64xf32>
    %18 = math.exp %17 : vector<64x64xf32>
    %cst_12 = arith.constant dense<0.000000e+00> : vector<64xf32>
    %19 = vector.multi_reduction <add>, %18, %cst_12 [1] : vector<64x64xf32> to vector<64xf32>
    %20 = vector.shape_cast %19 : vector<64xf32> to vector<64x1xf32>
    %21 = vector.broadcast %20 : vector<64x1xf32> to vector<64x64xf32>
    %22 = arith.divf %18, %21 : vector<64x64xf32>
    %cst_13 = arith.constant dense<0.000000e+00> : vector<16x64xf32>
    %23 = tpu.matmul %3, %22, %cst_13 {dimension_numbers = #tpu.dot_dimension_numbers<[1], [1], [0], [0], [0, 0, 1, 0], [], []>} : vector<16x64xf32>, vector<64x64xf32>, vector<16x64xf32> -> vector<16x64xf32>
    %c0_14 = arith.constant 0 : index
    %c0_15 = arith.constant 0 : index
    %c0_16 = arith.constant 0 : index
    %24 = vector.load %arg6[%c0_14, %c0_15, %c0_16] : memref<1x16x64xf32, #tpu.memory_space<vmem>>, vector<1x16x64xf32>
    %25 = vector.shape_cast %24 : vector<1x16x64xf32> to vector<16x64xf32>
    %26 = vector.shape_cast %23 : vector<16x64xf32> to vector<1x16x64xf32>
    tpu.vector_store %arg6[%c0_14, %c0_15, %c0_16], %26 {strides = array<i32>} : memref<1x16x64xf32, #tpu.memory_space<vmem>>, vector<1x16x64xf32>,
    return
  }
  func.func @transform_0(%arg0: i32, %arg1: i32) -> (i32, i32, i32) {
    %c0_i32 = arith.constant 0 : i32
    %c0_i32_0 = arith.constant 0 : i32
    return %arg0, %c0_i32, %arg1 : i32, i32, i32
  }
  func.func @transform_1(%arg0: i32, %arg1: i32) -> (i32, i32, i32) {
    %c0_i32 = arith.constant 0 : i32
    %c0_i32_0 = arith.constant 0 : i32
    %c0_i32_1 = arith.constant 0 : i32
    return %arg0, %c0_i32, %c0_i32_0 : i32, i32, i32
  }
  func.func @transform_2(%arg0: i32, %arg1: i32) -> (i32, i32) {
    %c0_i32 = arith.constant 0 : i32
    %c0_i32_0 = arith.constant 0 : i32
    %c0_i32_1 = arith.constant 0 : i32
    return %c0_i32, %c0_i32_0 : i32, i32
  }
  func.func @transform_3(%arg0: i32, %arg1: i32) -> (i32, i32) {
    %c0_i32 = arith.constant 0 : i32
    %c0_i32_0 = arith.constant 0 : i32
    %c0_i32_1 = arith.constant 0 : i32
    return %c0_i32, %c0_i32_0 : i32, i32
  }
  func.func @transform_4(%arg0: i32, %arg1: i32) -> (i32, i32, i32) {
    %c0_i32 = arith.constant 0 : i32
    %c0_i32_0 = arith.constant 0 : i32
    return %arg0, %c0_i32, %arg1 : i32, i32, i32
  }
}

</mosaic_0001>

<bundles_post_ra>
// kernel: tpu_custom_call.1
= control target key start
LH: loop header
LB: loop body
LE: loop exit
PB: predicated region body
PF: predicated region fallthrough
CT: control target
= control target key end

     0   :  { %s1474_s0 = inlined_call_operand.hbm [shape: f32[2,16,64], index: 0, kind: input, shape index: {}]   ;;  %s1475_s1 = inlined_call_operand.hbm [shape: f32[2,16,64], index: 1, kind: input, shape index: {}]   ;;  %s1476_s2 = inlined_call_operand.vmem [shape: f32[16,16], index: 2, kind: input, shape index: {}]   ;;  %s1477_s3 = inlined_call_operand.vmem [shape: f32[16,1], index: 3, kind: input, shape index: {}]   ;;  %s1478_s4 = inlined_call_operand.hbm [shape: f32[2,16,64], index: 4, kind: output, shape index: {}]  }
   0x1   :  { %1480 = sst [smem:[#allocation12_spill]] %s1474_s0 }
   0x2   :  { %9 = vsyncpa [#allocation3], 0 }
   0x3   :  { %11 = vsyncpa [#allocation3 + $0x1], 0 }
   0x4   :  { %12 = vsyncpa [#allocation6], 0 }
   0x5   :  { %14 = vsyncpa [#allocation6 + $0x1], 0 }
   0x6   :  { %15 = vsyncpa [#allocation4], 0 }
   0x7   :  { %17 = vsyncpa [#allocation4 + $0x1], 0  ;;  %s1179_s15 = smov 0   ;;  %s1181_s16 = smov 0  }
   0x8   :  { %s1183_s17 = smov 0   ;;  %s1185_s18 = smov 0  }
   0x9   :  { %s1187_s19 = smov 0   ;;  %s1189_s20 = smov 0  }
   0xa LB: > { %s842_s21 = sadd.s32 4294967295, %s1147_s20   ;;  %s843_s22 = sadd.s32 4294967294, %s1147_s20   ;;  %s1147_s20 = sphi %s1189_s20, %s23_s20   ;;  %s1143_s19 = sphi %s1187_s19, %s1495_s19   ;;  %s1139_s18 = sphi %s1185_s18, %s1494_s18   ;;  %s1135_s17 = sphi %s1183_s17, %s1493_s17   ;;  %s1131_s16 = sphi %s1181_s16, %s1492_s16   ;;  %s1127_s15 = sphi %s1179_s15, %s1491_s15  }
   0xb   : > { %s35_s23 = sadd.s32 1, %s1143_s19  ;;  %s44_s24 = sadd.s32 1, %s1135_s17 }
   0xc   : > { %p37_p0 = scmp.ge.s32.totalorder %s35_s23, 2  ;;  %p51_p1 = scmp.ne.s32.totalorder %s1135_s17, %s1131_s16 }
   0xd   : > { %p52_p2 = scmp.eq.s32.totalorder %s1147_s20, 0  ;;  %p57_p3 = scmp.ne.s32.totalorder %s1131_s16, %s1127_s15 }
   0xe   : > { %s1497_s23 = smov (%p37_p0, %s35_s23), 0  ;;  %p58_p5 = scmp.eq.s32.totalorder %s842_s21, 0 }
   0xf   : > { %1481 = sst [smem:[#allocation11_spill]] %s1497_s23  ;;  %p1220_p4 = por %p52_p2, %p51_p1 }
  0x10   : > { %s39_s26 = ssub.s32 %s1143_s19, %s1497_s23  ;;  %p151_p6 = scmp.eq.s32.totalorder %s842_s21, 1 }
  0x11   : > { %p42_p7 = scmp.eq.s32.totalorder %s39_s26, 0  ;;  %p1226_p8 = por %p58_p5, %p57_p3 }
  0x12   : > { %p1230_p9 = por %p151_p6, %p51_p1  ;;  %p157_p10 = scmp.eq.s32.totalorder %s843_s22, 1 }
  0x13   : > { %s1235_s29 = scalar_select %p42_p7, %s1135_s17, %s44_s24  }
  0x14   : > { %p1237_p11 = por %p157_p10, %p57_p3  ;;  %p845_p12 = scmp.ge.s32.totalorder %s1147_s20, 2 }
  0x15   : > { %p911_p13 = scmp.lt.s32.totalorder %s1147_s20, 2  ;;  %s1244_s5 = sand.u32 1, %s1135_s17  }
  0x16   : > { %s846_s6 = sshll.u32 %s1244_s5, 4  ;;  %s887_s7 = sshll.u32 %s1143_s19, 4 }
  0x17   : > { %s1486_s0 = sld [smem:[#allocation12_spill]]  ;;  %s187_s11 = scalar_lea.vmem [#allocation2], %s846_s6 }
  0x18   : > { %s196_s12 = sshll.u32 %s187_s11, 4  ;;  %p1253_p0 = pnand %p911_p13, %p1220_p4  ;;  %s197_s12 = int_to_ptr.vmem [resolvable:$true] %s196_s12 }
  0x19   : > { %p852_p1 = scmp.ge.s32.totalorder %s1147_s20, 1  ;;  %s184_s21 = scalar_lea.sflag [#allocation3], %s1244_s5 }
  0x1a   : > { %s1149_s22 = smov 128   ;;  %s1150_s24 = smov 8  }
  0x1b   : > { %p226_p2 = scmp.lt.s32.totalorder %s1147_s20, 3  ;;  %s215_s9 = scalar_lea.hbm %s1475_s1, %s887_s7 }
  0x1c   : > { %s210_s25 = scalar_lea.vmem [#allocation5], %s846_s6 }
  0x1d   : > { %s193_s10 = scalar_lea.hbm %s1486_s0, %s887_s7  ;;  %p227_p3 = pnand %p852_p1, %p226_p2 }
  0x1e   : > { %s194_s13 = sshll.u32 %s193_s10, 4  ;;  %s216_s10 = sshll.u32 %s215_s9, 4  ;;  %s195_s13 = int_to_ptr.hbm [resolvable:$true] %s194_s13  ;;  %s217_s10 = int_to_ptr.hbm [resolvable:$true] %s216_s10 }
  0x1f   : > { %903 = dma.hbm_to_vmem [thread:$0]  (!%p1253_p0), %s195_s13, 256, %s197_s12, %s184_s21, %s1149_s22, %s1149_s22, %s1150_s24  }
  0x20   : > { %s218_s11 = sshll.u32 %s210_s25, 4  ;;  %s207_s0 = scalar_lea.sflag [#allocation6], %s1244_s5  ;;  %s219_s11 = int_to_ptr.vmem [resolvable:$true] %s218_s11 }
  0x21   : > { %906 = dma.hbm_to_vmem [thread:$0]  (!%p1253_p0), %s217_s10, 256, %s219_s11, %s207_s0, %s1149_s22, %s1149_s22, %s1150_s24  }
  0x22   : > { %230 = sbr.rel (%p227_p3) target bundleno = 973 (0x3cd), region = 36  ;;  %s1269_s23 = sand.u32 (!%p227_p3), 1, %s1131_s16  }
  0x23   : > { %s1272_s12 = sshll.u32 (!%p227_p3), %s1269_s23, 4  ;;  %s233_s7 = scalar_lea.sflag (!%p227_p3), [#allocation3], %s1269_s23 }
  0x24   : > { %s236_s13 = scalar_lea.vmem (!%p227_p3), [#allocation2], %s1272_s12 }
  0x27   : > { %1114 = dma.done.wait (%p1226_p8), %s233_s7, 256  }
  0x28   : > { %1116 = vsyncadd (%p1226_p8), %s233_s7, 4294967040  ;;  %s243_s0 = scalar_lea.sflag [#allocation6], %s1269_s23  ;;  %s246_s5 = scalar_lea.vmem [#allocation5], %s1272_s12 }
  0x29   : > { %1118 = dma.done.wait (%p1226_p8), %s243_s0, 256  }
  0x2a   : > { %1120 = vsyncadd (%p1226_p8), %s243_s0, 4294967040  ;;  %v277_v0 = vld [vmem:[%s236_s13] sm:$0xff]  ;;  %v282_v1 = vld [vmem:[%s1476_s2 + $0x8] sm:$0xff]  ;;  %vm315_vm0 = vcmask 130048   ;;  %v1151_v10 = vmov 0   ;;  %vm395_vm1 = vcmask 523264  }
  0x2b   : > { %283 = vxpose.xlu0.b32.start [1/2] (short) (narrow) %v277_v0, 64  ;;  %354 = vmatpush.msra.mxu0 %v282_v1  ;;  %v281_v2 = vld [vmem:[%s1476_s2] sm:$0xff]  ;;  %v278_v3 = vld [vmem:[%s236_s13 + $0x8] sm:$0xff]  ;;  %s889_s9 = sshll.u32 %s1139_s18, 4  ;;  %s276_s10 = scalar_lea.vmem [#allocation7], %s1272_s12 }
  0x2c   : > { %890 = vmatpush.msra.mxu3 %v282_v1  ;;  %v381_v8 = vld [vmem:[%s1477_s3] sm:$0xff]  ;;  %v1301_v9 = vld [vmem:[%s246_s5 + $0x8] sm:$0xff]  ;;  %967 = vset.pattern.permute.xlu1 %v1151_v10  ;;  %s730_s7 = scalar_lea.hbm %s1478_s4, %s889_s9  ;;  %s731_s13 = sshll.u32 %s276_s10, 4  ;;  %s732_s13 = int_to_ptr.vmem [resolvable:$true] %s731_s13 }
  0x2d   : > { %355 = vmatpush.msra.mxu0 %v281_v2  ;;  %443 = vmatpush.msra.mxu1 %v1301_v9  ;;  %v382_v12 = vld [vmem:[%s1477_s3 + $0x8] sm:$0xff]  ;;  %v1314_v16 = vld [vmem:[%s246_s5] sm:$0xff]  ;;  %s733_s0 = sshll.u32 %s730_s7, 4  ;;  %s718_s5 = scalar_lea.sflag [#allocation4], %s1269_s23  ;;  %s734_s0 = int_to_ptr.hbm [resolvable:$true] %s733_s0 }
  0x2e   : > { %891 = vmatpush.msra.mxu3 %v281_v2  ;;  %385 = vperm.xlu1 %967, %v381_v8   ;;  %s1075_s6 = sshra.s32 %s734_s0, 4  ;;  %s1081_s21 = scalar_lea.hbm %s1478_s4, 32  ;;  %s1076_s6 = int_to_ptr.hbm [resolvable:$true] %s1075_s6 }
  0x2f   : > { %444 = vmatpush.msra.mxu1 %v1314_v16  ;;  %s1077_s18 = scalar_lea.hbm %s1076_s6, 16  ;;  %p1082_p7 = scmp.lt.s32.totalorder %s1076_s6, %s1478_s4 }
  0x30   : > { %892 = vmatpush.msrb.mxu3 %v1301_v9  ;;  %p1078_p4 = scmp.ne.s32.totalorder %s1076_s6, %s1077_s18  ;;  %p1083_p8 = scmp.lt.s32.totalorder %s1081_s21, %s1077_s18 }
  0x32   : > { %893 = vmatpush.msrb.mxu3 %v1314_v16  ;;  %p1079_p5 = pnand %p1078_p4, %p1230_p9  ;;  %p1084_p10 = por %p1083_p8, %p1082_p7 }
  0x33   : > { %284 = vxpose.xlu0.b32.end [2/2] (short) (narrow) %v278_v3, 64 }
  0x34   : > { %p1080_p6 = pneg %p1079_p5 }
  0x36   : > { %390 = vperm.xlu1 %967, %v382_v12   ;;  %p1085_p13 = pnand %p1084_p10, %p1080_p6 }
  0x9a   : > { %968 = vset.pattern.permute.xlu0 %v1151_v10 }
  0xa0   : > { %v386_v25 = vpop.permute.xlu1 %385 }
  0xa1   : > { %v393_v27 = vmul.f32 %v386_v25, %v1314_v16 }
  0xa3   : > { %v396_v30 = vsel %vm395_vm1, %v393_v27, 0.0 }
  0xa8   : > { %v391_v26 = vpop.permute.xlu1 %390 }
  0xa9   : > { %v394_v28 = vmul.f32 %v391_v26, %v1301_v9 }
  0xab   : > { %v397_v31 = vsel %vm395_vm1, %v394_v28, 0.0 }
  0xac   : > { %v398_v32 = vadd.f32 %v397_v31, %v396_v30 }
  0xae   : > { %v399_v34 = vrot.slane %v398_v32, 4 }
  0xb0   : > { %v400_v35 = vadd.f32 %v399_v34, %v398_v32 }
  0xb2   : > { %v401_v37 = vrot.slane %v400_v35, 2 }
  0xb4   : > { %v402_v38 = vadd.f32 %v401_v37, %v400_v35 }
  0xb6   : > { %v403_v40 = vrot.slane %v402_v38, 1 }
  0xb8   : > { %v404_v41 = vadd.f32 %v403_v40, %v402_v38 }
  0xcf   : > { %v299_v4 = vpop.trf.xlu0 }
  0xd0   : > { %856 = vmatmul.msk.f32.vlgmr.msra.gmra.mxu0 %vm315_vm0, %v299_v4 }
  0xd7   : > { %v300_v5 = vpop.trf.xlu0 }
  0xd8   : > { %857 = vmatmul.msk.f32.gmra.mxu0 %vm315_vm0, %v300_v5 }
  0xdf   : > { %v301_v6 = vpop.trf.xlu0 }
  0xe0   : > { %858 = vmatmul.msk.f32.gmra.mxu0 %vm315_vm0, %v301_v6 }
  0xe7   : > { %v302_v7 = vpop.trf.xlu0 }
  0xe8   : > { %859 = vmatmul.msk.f32.gmra.mxu0 %vm315_vm0, %v302_v7 }
  0xef   : > { %v303_v11 = vpop.trf.xlu0 }
  0xf0   : > { %860 = vmatmul.msk.f32.gmra.mxu0 %vm315_vm0, %v303_v11 }
  0xf7   : > { %v304_v13 = vpop.trf.xlu0 }
  0xf8   : > { %861 = vmatmul.msk.f32.gmra.mxu0 %vm315_vm0, %v304_v13 }
  0xff   : > { %v305_v14 = vpop.trf.xlu0 }
 0x100   : > { %862 = vmatmul.msk.f32.vlgmr.msra.gmra.mxu3 %vm315_vm0, %v305_v14 }
 0x107   : > { %v306_v15 = vpop.trf.xlu0 }
 0x108   : > { %863 = vmatmul.msk.f32.gmra.mxu3 %vm315_vm0, %v306_v15 }
 0x14d   : > { %v357_v17 = vpop.f32.mrf.mxu0 }
 0x14e   : > { %864 = vmatmul.msk.f32.vlgmr.msra.gmra.mxu1 %vm315_vm0, %v357_v17 }
 0x155   : > { %v360_v18 = vpop.f32.mrf.mxu0 }
 0x156   : > { %865 = vmatmul.msk.f32.gmra.mxu1 %vm315_vm0, %v360_v18 }
 0x15d   : > { %v363_v19 = vpop.f32.mrf.mxu0 }
 0x15e   : > { %866 = vmatmul.msk.f32.gmra.mxu1 %vm315_vm0, %v363_v19 }
 0x165   : > { %v366_v20 = vpop.f32.mrf.mxu0 }
 0x166   : > { %867 = vmatmul.msk.f32.gmra.mxu1 %vm315_vm0, %v366_v20 }
 0x16d   : > { %v369_v21 = vpop.f32.mrf.mxu0 }
 0x16e   : > { %868 = vmatmul.msk.f32.gmra.mxu1 %vm315_vm0, %v369_v21 }
 0x175   : > { %v372_v22 = vpop.f32.mrf.mxu0 }
 0x176   : > { %869 = vmatmul.msk.f32.gmra.mxu1 %vm315_vm0, %v372_v22 }
 0x183   : > { %v375_v23 = vpop.f32.mrf.mxu3 }
 0x184   : > { %870 = vmatmul.msk.f32.vlgmr.msrb.gmra.mxu3 %vm315_vm0, %v375_v23 }
 0x18b   : > { %v378_v24 = vpop.f32.mrf.mxu3 }
 0x18c   : > { %871 = vmatmul.msk.f32.gmra.mxu3 %vm315_vm0, %v378_v24 }
 0x1cb   : > { %v446_v29 = vpop.f32.mrf.mxu1 }
 0x1cc   : > { %v447_v60 = vadd.f32 %v446_v29, %v404_v41 }
 0x1ce   : > { %v470_v61 = vsel %vm395_vm1, %v447_v60, -inf }
 0x1d3   : > { %v449_v33 = vpop.f32.mrf.mxu1 }
 0x1d4   : > { %v450_v58 = vadd.f32 %v449_v33, %v404_v41 }
 0x1d6   : > { %v473_v59 = vsel %vm395_vm1, %v450_v58, -inf }
 0x1db   : > { %v452_v36 = vpop.f32.mrf.mxu1 }
 0x1dc   : > { %v453_v56 = vadd.f32 %v452_v36, %v404_v41 }
 0x1de   : > { %v476_v57 = vsel %vm395_vm1, %v453_v56, -inf }
 0x1e3   : > { %v455_v39 = vpop.f32.mrf.mxu1 }
 0x1e4   : > { %v456_v54 = vadd.f32 %v455_v39, %v404_v41 }
 0x1e6   : > { %v479_v55 = vsel %vm395_vm1, %v456_v54, -inf }
 0x1eb   : > { %v458_v42 = vpop.f32.mrf.mxu1 }
 0x1ec   : > { %v459_v43 = vadd.f32 %v458_v42, %v404_v41 }
 0x1ee   : > { %v482_v44 = vsel %vm395_vm1, %v459_v43, -inf }
 0x1ef   : > { %483 = vmax.xlane.f32.xlu1 %v482_v44 }
 0x1f3   : > { %v461_v45 = vpop.f32.mrf.mxu1 }
 0x1f4   : > { %v462_v46 = vadd.f32 %v461_v45, %v404_v41 }
 0x1f6   : > { %v485_v47 = vsel %vm395_vm1, %v462_v46, -inf }
 0x1f7   : > { %486 = vmax.xlane.f32.xlu0 %v485_v47 }
 0x207   : > { %v464_v48 = vpop.f32.mrf.mxu3 }
 0x208   : > { %v465_v49 = vadd.f32 %v464_v48, %v404_v41 }
 0x20a   : > { %v488_v50 = vsel %vm395_vm1, %v465_v49, -inf }
 0x20b   : > { %489 = vmax.xlane.f32.xlu2 %v488_v50 }
 0x20f   : > { %v467_v51 = vpop.f32.mrf.mxu3 }
 0x210   : > { %v468_v52 = vadd.f32 %v467_v51, %v404_v41 }
 0x212   : > { %v491_v53 = vsel %vm395_vm1, %v468_v52, -inf }
 0x213   : > { %492 = vmax.xlane.f32.xlu2 %v491_v53 }
 0x21b   : > { %480 = vmax.xlane.f32.xlu2 %v479_v55 }
 0x223   : > { %477 = vmax.xlane.f32.xlu2 %v476_v57 }
 0x22b   : > { %474 = vmax.xlane.f32.xlu2 %v473_v59 }
 0x233   : > { %471 = vmax.xlane.f32.xlu2 %v470_v61 }
 0x262   : > { %v484_v10 = vpop.xlane.xlu1 %483 }
 0x263   : > { %v498_v14 = vsub.f32 %v459_v43, %v484_v10 }
 0x265   : > { %v510_v18 = vmul.f32 1.442695, %v498_v14 }
 0x26a   : > { %v487_v62 = vpop.xlane.xlu0 %486 }
 0x26b   : > { %v499_v63 = vsub.f32 %v462_v46, %v487_v62 }
 0x26d   : > { %v512_v0 = vmul.f32 1.442695, %v499_v63 }
 0x26f   : > { %969 = vpow2.f32 %v512_v0 }
 0x275   : > { %v1338_v1 = vpop.eup %969 }
 0x276   : > { %v533_v2 = vsel %vm395_vm1, %v1338_v1, 0.0 }
 0x277   : > { %534 = vadd.xlane.f32.xlu1 %v533_v2 }
 0x27e   : > { %v490_v3 = vpop.xlane.xlu2 %489 }
 0x27f   : > { %v500_v6 = vsub.f32 %v465_v49, %v490_v3 }
 0x281   : > { %v514_v8 = vmul.f32 1.442695, %v500_v6 }
 0x286   : > { %v493_v4 = vpop.xlane.xlu2 %492 }
 0x287   : > { %v501_v5 = vsub.f32 %v468_v52, %v493_v4 }
 0x289   : > { %v516_v7 = vmul.f32 1.442695, %v501_v5 }
 0x28b   : > { %971 = vpow2.f32 %v516_v7 }
 0x28c   : > { %973 = vpow2.f32 %v514_v8 }
 0x28e   : > { %v481_v11 = vpop.xlane.xlu2 %480 }
 0x28f   : > { %v497_v12 = vsub.f32 %v456_v54, %v481_v11 }
 0x291   : > { %v1342_v13 = vpop.eup %971  ;;  %v508_v15 = vmul.f32 1.442695, %v497_v12 }
 0x292   : > { %v539_v17 = vsel %vm395_vm1, %v1342_v13, 0.0  ;;  %v1346_v20 = vpop.eup %973 }
 0x293   : > { %975 = vpow2.f32 %v508_v15  ;;  %540 = vadd.xlane.f32.xlu2 %v539_v17  ;;  %v536_v23 = vsel %vm395_vm1, %v1346_v20, 0.0 }
 0x294   : > { %977 = vpow2.f32 %v510_v18 }
 0x296   : > { %v478_v19 = vpop.xlane.xlu2 %477 }
 0x297   : > { %v496_v22 = vsub.f32 %v453_v56, %v478_v19 }
 0x299   : > { %v1348_v21 = vpop.eup %975  ;;  %v506_v25 = vmul.f32 1.442695, %v496_v22 }
 0x29a   : > { %v527_v24 = vsel %vm395_vm1, %v1348_v21, 0.0  ;;  %v1354_v27 = vpop.eup %977 }
 0x29b   : > { %537 = vadd.xlane.f32.xlu2 %v536_v23  ;;  %528 = vadd.xlane.f32.xlu1 %v527_v24  ;;  %979 = vpow2.f32 %v506_v25  ;;  %v530_v30 = vsel %vm395_vm1, %v1354_v27, 0.0 }
 0x29e   : > { %v475_v26 = vpop.xlane.xlu2 %474 }
 0x29f   : > { %v495_v28 = vsub.f32 %v450_v58, %v475_v26 }
 0x2a1   : > { %v504_v29 = vmul.f32 1.442695, %v495_v28  ;;  %v1358_v32 = vpop.eup %979 }
 0x2a2   : > { %v524_v36 = vsel %vm395_vm1, %v1358_v32, 0.0 }
 0x2a3   : > { %981 = vpow2.f32 %v504_v29  ;;  %531 = vadd.xlane.f32.xlu2 %v530_v30 }
 0x2a6   : > { %v472_v31 = vpop.xlane.xlu2 %471 }
 0x2a7   : > { %v494_v33 = vsub.f32 %v447_v60, %v472_v31 }
 0x2a9   : > { %v1360_v34 = vpop.eup %981  ;;  %v502_v35 = vmul.f32 1.442695, %v494_v33 }
 0x2aa   : > { %v521_v37 = vsel %vm395_vm1, %v1360_v34, 0.0 }
 0x2ab   : > { %983 = vpow2.f32 %v502_v35  ;;  %525 = vadd.xlane.f32.xlu2 %v524_v36  ;;  %522 = vadd.xlane.f32.xlu1 %v521_v37 }
 0x2b1   : > { %v1366_v38 = vpop.eup %983 }
 0x2b2   : > { %v518_v39 = vsel %vm395_vm1, %v1366_v38, 0.0 }
 0x2b3   : > { %519 = vadd.xlane.f32.xlu2 %v518_v39 }
 0x2ea   : > { %v535_v40 = vpop.xlane.xlu1 %534 }
 0x2eb   : > { %985 = vrcp.f32 %v535_v40  ;;  %vm622_vm8 = vweird.f32 %v535_v40  ;;  %v628_v4 = vand.u32 2147483648, %v535_v40  ;;  %v626_v6 = vand.u32 2147483647, %v535_v40 }
 0x2ed   : > { %v629_v19 = vor.u32 1.1754944e-38, %v628_v4  ;;  %vm627_vm12 = vcmp.eq.f32.partialorder %v626_v6, 8.507059e+37 }
 0x2f1   : > { %v986_v42 = vpop.eup %985 }
 0x2f2   : > { %v618_v44 = vmul.f32 %v986_v42, %v535_v40  ;;  %vm623_vm6 = vweird.f32 %v986_v42 }
 0x2f3   : > { %vm1382_vm10 = vmor %vm622_vm8, %vm623_vm6 }
 0x2f4   : > { %v619_v49 = vsub.f32 1.0, %v618_v44 }
 0x2f6   : > { %v620_v56 = vmul.f32 %v986_v42, %v619_v49 }
 0x2f8   : > { %v621_v3 = vadd.f32 %v986_v42, %v620_v56 }
 0x2fa   : > { %v625_v18 = vsel %vm1382_vm10, %v986_v42, %v621_v3 }
 0x2fb   : > { %v630_v26 = vsel %vm627_vm12, %v629_v19, %v625_v18 }
 0x2fc   : > { %v631_v39 = vmul.f32 %v1338_v1, %v630_v26 }
 0x306   : > { %v541_v41 = vpop.xlane.xlu2 %540 }
 0x307   : > { %987 = vrcp.f32 %v541_v41  ;;  %v658_v51 = vand.u32 2147483648, %v541_v41  ;;  %v656_v52 = vand.u32 2147483647, %v541_v41  ;;  %vm652_vm3 = vweird.f32 %v541_v41 }
 0x309   : > { %v659_v60 = vor.u32 1.1754944e-38, %v658_v51  ;;  %vm657_vm5 = vcmp.eq.f32.partialorder %v656_v52, 8.507059e+37 }
 0x30d   : > { %v988_v43 = vpop.eup %987 }
 0x30e   : > { %v648_v45 = vmul.f32 %v988_v43, %v541_v41  ;;  %v538_v46 = vpop.xlane.xlu2 %537  ;;  %v1370_v47 = vpop.xlane.xlu1 %528  ;;  %vm653_vm2 = vweird.f32 %v988_v43 }
 0x30f   : > { %989 = vrcp.f32 %v538_v46  ;;  %vm654_vm4 = vmor %vm652_vm3, %vm653_vm2  ;;  %v643_v5 = vand.u32 2147483648, %v538_v46  ;;  %vm637_vm9 = vweird.f32 %v538_v46  ;;  %v641_v10 = vand.u32 2147483647, %v538_v46 }
 0x310   : > { %v649_v48 = vsub.f32 1.0, %v648_v45  ;;  %991 = vrcp.f32 %v1370_v47  ;;  %vm592_vm2 = vweird.f32 %v1370_v47  ;;  %v598_v37 = vand.u32 2147483648, %v1370_v47 }
 0x311   : > { %v644_v22 = vor.u32 1.1754944e-38, %v643_v5  ;;  %vm642_vm13 = vcmp.eq.f32.partialorder %v641_v10, 8.507059e+37  ;;  %v596_v44 = vand.u32 2147483647, %v1370_v47 }
 0x312   : > { %v650_v50 = vmul.f32 %v988_v43, %v649_v48  ;;  %v599_v49 = vor.u32 1.1754944e-38, %v598_v37 }
 0x313   : > { %vm597_vm6 = vcmp.eq.f32.partialorder %v596_v44, 8.507059e+37 }
 0x314   : > { %v651_v53 = vadd.f32 %v988_v43, %v650_v50 }
 0x315   : > { %v990_v54 = vpop.eup %989 }
 0x316   : > { %v1373_v55 = vpop.eup %991  ;;  %v633_v57 = vmul.f32 %v990_v54, %v538_v46  ;;  %v1375_v58 = vpop.xlane.xlu2 %531  ;;  %v655_v59 = vsel %vm654_vm4, %v988_v43, %v651_v53  ;;  %vm638_vm7 = vweird.f32 %v990_v54 }
 0x317   : > { %993 = vrcp.f32 %v1375_v58  ;;  %v588_v62 = vmul.f32 %v1373_v55, %v1370_v47  ;;  %v660_v63 = vsel %vm657_vm5, %v659_v60, %v655_v59  ;;  %vm639_vm11 = vmor %vm637_vm9, %vm638_vm7  ;;  %v613_v29 = vand.u32 2147483648, %v1375_v58 }
 0x318   : > { %v634_v61 = vsub.f32 1.0, %v633_v57  ;;  %v661_v0 = vmul.f32 %v1342_v13, %v660_v63  ;;  %v611_v31 = vand.u32 2147483647, %v1375_v58  ;;  %vm607_vm15 = vweird.f32 %v1375_v58 }
 0x319   : > { %v589_v7 = vsub.f32 1.0, %v588_v62  ;;  %vm593_vm0 = vweird.f32 %v1373_v55  ;;  %v614_v40 = vor.u32 1.1754944e-38, %v613_v29 }
 0x31a   : > { %v635_v2 = vmul.f32 %v990_v54, %v634_v61  ;;  %872 = vmatpush.xpose.msk.msra.mxu2 %vm395_vm1, %v661_v0  ;;  %vm612_vm4 = vcmp.eq.f32.partialorder %v611_v31, 8.507059e+37  ;;  %vm594_vm5 = vmor %vm592_vm2, %vm593_vm0 }
 0x31b   : > { %v590_v23 = vmul.f32 %v1373_v55, %v589_v7 }
 0x31c   : > { %v636_v8 = vadd.f32 %v990_v54, %v635_v2 }
 0x31d   : > { %v994_v12 = vpop.eup %993  ;;  %v591_v35 = vadd.f32 %v1373_v55, %v590_v23 }
 0x31e   : > { %v603_v13 = vmul.f32 %v994_v12, %v1375_v58  ;;  %v1387_v14 = vpop.xlane.xlu2 %525  ;;  %v1389_v15 = vpop.xlane.xlu1 %522  ;;  %v640_v17 = vsel %vm639_vm11, %v990_v54, %v636_v8  ;;  %vm608_vm14 = vweird.f32 %v994_v12 }
 0x31f   : > { %995 = vrcp.f32 %v1387_v14  ;;  %v645_v25 = vsel %vm642_vm13, %v644_v22, %v640_v17  ;;  %vm609_vm3 = vmor %vm607_vm15, %vm608_vm14  ;;  %v595_v48 = vsel %vm594_vm5, %v1373_v55, %v591_v35  ;;  %v583_v50 = vand.u32 2147483648, %v1387_v14 }
 0x320   : > { %v604_v24 = vsub.f32 1.0, %v603_v13  ;;  %997 = vrcp.f32 %v1389_v15  ;;  %v646_v30 = vmul.f32 %v1346_v20, %v645_v25  ;;  %v581_v53 = vand.u32 2147483647, %v1387_v14 }
 0x321   : > { %v600_v56 = vsel %vm597_vm6, %v599_v49, %v595_v48  ;;  %vm577_vm8 = vweird.f32 %v1387_v14  ;;  %vm562_vm9 = vweird.f32 %v1389_v15  ;;  %v584_v58 = vor.u32 1.1754944e-38, %v583_v50 }
 0x322   : > { %v605_v28 = vmul.f32 %v994_v12, %v604_v24  ;;  %873 = vmatpush.xpose.msk.msra.mxu2 %vm395_vm1, %v646_v30  ;;  %v568_v60 = vand.u32 2147483648, %v1389_v15  ;;  %v601_v62 = vmul.f32 %v1348_v21, %v600_v56  ;;  %vm582_vm12 = vcmp.eq.f32.partialorder %v581_v53, 8.507059e+37 }
 0x324   : > { %v606_v33 = vadd.f32 %v994_v12, %v605_v28  ;;  %v569_v5 = vor.u32 1.1754944e-38, %v568_v60 }
 0x325   : > { %v996_v36 = vpop.eup %995 }
 0x326   : > { %v998_v20 = vpop.eup %997  ;;  %v573_v41 = vmul.f32 %v996_v36, %v1387_v14  ;;  %v520_v42 = vpop.xlane.xlu2 %519  ;;  %v610_v43 = vsel %vm609_vm3, %v994_v12, %v606_v33  ;;  %874 = vmatpush.xpose.msk.msra.mxu2 %vm395_vm1, %v631_v39  ;;  %vm578_vm7 = vweird.f32 %v996_v36 }
 0x327   : > { %v558_v45 = vmul.f32 %v998_v20, %v1389_v15  ;;  %999 = vrcp.f32 %v520_v42  ;;  %v615_v1 = vsel %vm612_vm4, %v614_v40, %v610_v43  ;;  %vm563_vm10 = vweird.f32 %v998_v20  ;;  %vm579_vm11 = vmor %vm577_vm8, %vm578_vm7 }
 0x328   : > { %v574_v46 = vsub.f32 1.0, %v573_v41  ;;  %v616_v52 = vmul.f32 %v1354_v27, %v615_v1  ;;  %v566_v27 = vand.u32 2147483647, %v1389_v15  ;;  %vm564_vm13 = vmor %vm562_vm9, %vm563_vm10  ;;  %v553_v6 = vand.u32 2147483648, %v520_v42 }
 0x329   : > { %v559_v51 = vsub.f32 1.0, %v558_v45  ;;  %v551_v8 = vand.u32 2147483647, %v520_v42  ;;  %vm547_vm0 = vweird.f32 %v520_v42 }
 0x32a   : > { %v575_v47 = vmul.f32 %v996_v36, %v574_v46  ;;  %875 = vmatpush.xpose.msk.msra.mxu2 %vm395_vm1, %v616_v52  ;;  %vm567_vm14 = vcmp.eq.f32.partialorder %v566_v27, 8.507059e+37  ;;  %v554_v21 = vor.u32 1.1754944e-38, %v553_v6 }
 0x32b   : > { %v560_v54 = vmul.f32 %v998_v20, %v559_v51  ;;  %vm552_vm3 = vcmp.eq.f32.partialorder %v551_v8, 8.507059e+37 }
 0x32c   : > { %v576_v55 = vadd.f32 %v996_v36, %v575_v47 }
 0x32d   : > { %v1000_v57 = vpop.eup %999  ;;  %v561_v59 = vadd.f32 %v998_v20, %v560_v54 }
 0x32e   : > { %v543_v61 = vmul.f32 %v1000_v57, %v520_v42  ;;  %v580_v63 = vsel %vm579_vm11, %v996_v36, %v576_v55  ;;  %876 = vmatpush.xpose.msk.msra.mxu2 %vm395_vm1, %v601_v62  ;;  %vm548_vm15 = vweird.f32 %v1000_v57 }
 0x32f   : > { %v585_v0 = vsel %vm582_vm12, %v584_v58, %v580_v63  ;;  %v565_v4 = vsel %vm564_vm13, %v998_v20, %v561_v59  ;;  %vm549_vm2 = vmor %vm547_vm0, %vm548_vm15 }
 0x330   : > { %v544_v2 = vsub.f32 1.0, %v543_v61  ;;  %v586_v3 = vmul.f32 %v1358_v32, %v585_v0  ;;  %v570_v10 = vsel %vm567_vm14, %v569_v5, %v565_v4 }
 0x331   : > { %v571_v12 = vmul.f32 %v1360_v34, %v570_v10 }
 0x332   : > { %v545_v7 = vmul.f32 %v1000_v57, %v544_v2  ;;  %877 = vmatpush.xpose.msk.msra.mxu2 %vm395_vm1, %v586_v3 }
 0x334   : > { %v546_v11 = vadd.f32 %v1000_v57, %v545_v7 }
 0x336   : > { %v550_v32 = vsel %vm549_vm2, %v1000_v57, %v546_v11  ;;  %878 = vmatpush.xpose.msk.msra.mxu2 %vm395_vm1, %v571_v12 }
 0x337   : > { %v555_v13 = vsel %vm552_vm3, %v554_v21, %v550_v32 }
 0x338   : > { %v556_v14 = vmul.f32 %v1366_v38, %v555_v13 }
 0x33a   : > { %879 = vmatpush.xpose.msk.msra.mxu2 %vm395_vm1, %v556_v14 }
 0x33d   : > { %880 = vmatmul.msk.f32.vlgmr.msra.gmra.mxu2 %vm395_vm1, %v1314_v16 }
 0x345   : > { %881 = vmatmul.msk.f32.gmra.mxu2 %vm395_vm1, %v1301_v9 }
 0x3c0   : > { %v709_v15 = vpop.f32.mrf.mxu2 }
 0x3c1   : > { %715 = vst.msk [vmem:[%s276_s10] sm:$0xff] %vm395_vm1, %v709_v15 }
 0x3c8   : > { %v712_v34 = vpop.f32.mrf.mxu2 }
 0x3c9   : > { %716 = vst.msk [vmem:[%s276_s10 + $0x8] sm:$0xff] %vm395_vm1, %v712_v34 }
 0x3ca   : > { %1088 = shalt.err (!%p1085_p13)
}
 0x3cb   : > { %s1152_s23 = smov 128   ;;  %s1153_s24 = smov 8  }
 0x3cc   : > { %898 = dma.vmem_to_hbm [thread:$0]  (%p1230_p9), %s732_s13, 256, %s734_s0, %s718_s5, %s1152_s23, %s1152_s23, %s1153_s24  }
 0x3cd PF: > { %s748_s26 = sand.u32 1, %s1127_s15   ;;  %p908_p0 = pnand %p845_p12, %p1237_p11 }
 0x3ce   : > { %s749_s8 = scalar_lea.sflag [#allocation4], %s748_s26 }
 0x3cf   : > { %p909_p1 = pneg %p908_p0 }
 0x3d1   : > { %1122 = dma.done.wait (%p909_p1), %s749_s8, 256  }
 0x3d2   : > { %1124 = vsyncadd (%p909_p1), %s749_s8, 4294967040  ;;  %s23_s20 = sadd.s32 1, %s1147_s20   ;;  %s1490_s28 = sld [smem:[#allocation11_spill]] }
 0x3d3   : > { %p20_p2 = scmp.ge.s32.totalorder %s23_s20, 4   ;;  %s1491_s15 = smov %s1131_s16 }
 0x3d4   : > { %s1492_s16 = smov %s1135_s17  ;;  %s1493_s17 = smov %s1235_s29 }
 0x3d5   : > { %s1494_s18 = smov %s1143_s19  ;;  %22 = sbr.rel (!%p20_p2) target bundleno = 10 (0xa), region = 94 }
 0x3d8   : > { %s1495_s19 = smov %s1490_s28 }
 0x3da   :  { %755 = vsyncpa [#allocation3], 1 }
 0x3db   :  { %757 = vsyncpa [#allocation3 + $0x1], 1 }
 0x3dc   :  { %758 = vsyncpa [#allocation6], 1 }
 0x3dd   :  { %760 = vsyncpa [#allocation6 + $0x1], 1 }
 0x3de   :  { %761 = vsyncpa [#allocation4], 1 }
 0x3df   :  { %763 = vsyncpa [#allocation4 + $0x1], 1 }

</bundles_post_ra>
